<compile_context>
chip_gen: v6e
topology: v6e:2x2x1
jax: 0.10.0
libtpu: 0.0.40
codegen_flags: <defaults>
</compile_context>

<pallas_src>
import functools

import jax
import jax.numpy as jnp
from jax.experimental import pallas as pl
from jax.experimental.pallas import tpu as pltpu


def _ce_prob_kernel(labels_ref, wrow_ref, probs_ref, oloss_ref, owsum_ref,
                    loss_vec, wsum_vec, *, n_rows, clip_thres):
    s = pl.program_id(0)                    # batch split (parallel / megacore)
    k = pl.program_id(1)                    # row-tile step within the split
    n_steps = pl.num_programs(1)

    # Zero the resident per-split accumulators on the split's first step.
    @pl.when(k == 0)
    def _():
        loss_vec[...] = jnp.zeros_like(loss_vec)
        wsum_vec[...] = jnp.zeros_like(wsum_vec)

    probs = probs_ref[...]                  # (TB, C) native dtype
    labels = labels_ref[...]                # (TB, 1) int32
    w_rows = wrow_ref[...]                  # (TB, 1) float32 (= weight[label])
    tb, c = probs.shape

    # Vectorised "gather" of the label column: one-hot compare + lane reduce.
    col_ids = jax.lax.broadcasted_iota(jnp.int32, (tb, c), 1)
    onehot = col_ids == labels              # (TB, C) bool
    picked = jnp.sum(jnp.where(onehot, probs, 0.0),
                     axis=-1, keepdims=True).astype(jnp.float32)   # (TB, 1)

    # clamp_min + log on just the picked column (TB values, not TB*C).
    picked_logp = jnp.log(jnp.maximum(picked, clip_thres))          # (TB, 1)

    # Mask rows past the true batch size (ragged last tile and any padding
    # steps of the split decomposition).  The mask is applied *after* the
    # multiply so NaNs from garbage pad rows never reach the accumulator.
    tile_idx = s * n_steps + k
    row_ids = jax.lax.broadcasted_iota(jnp.int32, (tb, 1), 0) + tile_idx * tb
    valid = row_ids < n_rows                # (TB, 1) bool

    w_rows = jnp.where(valid, w_rows, 0.0)
    contrib = jnp.where(valid, -picked_logp * w_rows, 0.0)

    loss_vec[...] += contrib
    wsum_vec[...] += w_rows

    # Per-split finalize: one cross-sublane reduce, written to this split's row.
    @pl.when(k == n_steps - 1)
    def _():
        oloss_ref[...] = jnp.sum(loss_vec[...], axis=0, keepdims=True)
        owsum_ref[...] = jnp.sum(wsum_vec[...], axis=0, keepdims=True)


def _choose_row_tile(n, c, itemsize, block_rows=None):
    """Pick a sublane-aligned row tile sized from a VMEM budget and C."""
    sublane = {4: 8, 2: 16, 1: 32}.get(itemsize, 8)
    row_bytes = max(c * itemsize, 1)
    target_block = 2 << 20          # ~2 MiB probs block: near HBM roofline
    max_block = 16 << 20            # x2 buffers = 32 MiB; fits v7x's 64 MiB VMEM
    tb = max(target_block // row_bytes, 1)
    tb = min(tb, max(max_block // row_bytes, 1))
    tb = min(tb, 4096)
    n_pad = ((n + sublane - 1) // sublane) * sublane
    tb = min(tb, n_pad)
    if block_rows is not None:
        tb = min(tb, block_rows)
    tb = max((tb // sublane) * sublane, sublane)
    return tb


def cross_entropy_loss_with_prob(probs, labels, weight=None, clip_thres=1e-8,
                                 block_rows=None):
    """Pallas TPU implementation of CrossEntropyLossWithProb.forward.

    probs: (N, C) float probabilities; labels: (N,) int class indices.
    weight: optional (C,) per-class weights.  Returns a float32 scalar.
    """
    n, c = probs.shape
    assert labels.shape == (n,)
    labels = labels.astype(jnp.int32)

    # Gather per-sample class weights once in the wrapper (trivial XLA gather);
    # the kernel then only streams an (N, 1) vector.
    if weight is None:
        w_rows = jnp.ones((n, 1), jnp.float32)
    else:
        w_rows = jnp.asarray(weight, jnp.float32)[labels].reshape(n, 1)
    labels2d = labels.reshape(n, 1)

    itemsize = jnp.dtype(probs.dtype).itemsize
    tb = _choose_row_tile(n, c, itemsize, block_rows)
    n_tiles = pl.cdiv(n, tb)

    # Split the batch across a leading "parallel" grid axis so v7x's two
    # TensorCores each stream roughly half the rows (harmless on 1-TC chips).
    n_splits = 2 if n_tiles >= 2 else 1
    steps_per_split = pl.cdiv(n_tiles, n_splits)

    def row_map(s, k):
        # Clamp so padding steps of the last split re-read a valid tile; the
        # in-kernel row-validity mask zeroes their contribution.
        return (jnp.minimum(s * steps_per_split + k, n_tiles - 1), 0)

    probs_block_bytes = tb * c * itemsize
    aux_block_bytes = tb * 4 * 2                     # labels + per-row weights
    vmem_needed = 2 * (probs_block_bytes + aux_block_bytes) + 2 * tb * 4
    vmem_limit = int(min(max(vmem_needed + (2 << 20), 16 << 20), 48 << 20))

    kernel = functools.partial(_ce_prob_kernel, n_rows=n,
                               clip_thres=float(clip_thres))

    loss_parts, wsum_parts = pl.pallas_call(
        kernel,
        out_shape=(jax.ShapeDtypeStruct((n_splits, 1), jnp.float32),
                   jax.ShapeDtypeStruct((n_splits, 1), jnp.float32)),
        grid_spec=pltpu.PrefetchScalarGridSpec(
            num_scalar_prefetch=0,
            grid=(n_splits, steps_per_split),
            in_specs=[
                pl.BlockSpec((tb, 1), row_map),      # labels
                pl.BlockSpec((tb, 1), row_map),      # weight[labels]
                pl.BlockSpec((tb, c), row_map),      # probs
            ],
            out_specs=[
                pl.BlockSpec((1, 1), lambda s, k: (s, 0)),
                pl.BlockSpec((1, 1), lambda s, k: (s, 0)),
            ],
            scratch_shapes=[
                pltpu.VMEM((tb, 1), jnp.float32),    # per-row loss accumulator
                pltpu.VMEM((tb, 1), jnp.float32),    # per-row weight accumulator
            ],
        ),
        compiler_params=pltpu.CompilerParams(
            dimension_semantics=("parallel", "arbitrary"),
            vmem_limit_bytes=vmem_limit),
    )(labels2d, w_rows, probs)

    # Weighted mean (== plain mean when weight is None / all ones).
    return jnp.sum(loss_parts) / jnp.sum(wsum_parts)


def _reference(probs, labels, weight=None, clip_thres=1e-8):
    p = jnp.maximum(probs.astype(jnp.float32), clip_thres)
    ll = jnp.log(p)
    n = p.shape[0]
    picked = ll[jnp.arange(n), labels]
    if weight is None:
        return -jnp.mean(picked)
    w = jnp.asarray(weight, jnp.float32)[labels]
    return -jnp.sum(w * picked) / jnp.sum(w)


if __name__ == "__main__":
    key = jax.random.PRNGKey(0)
    k1, k2, k3, k4, k5 = jax.random.split(key, 5)

    # Small case (single tile), weight=None path (module default).
    N, C = 8, 32
    logits = jax.random.normal(k1, (N, C), dtype=jnp.float32)
    probs = jax.nn.softmax(logits, axis=-1)
    labels = jax.random.randint(k2, (N,), 0, C, dtype=jnp.int32)
    class_weight = jax.random.uniform(k3, (C,), dtype=jnp.float32) + 0.5

    loss = jax.block_until_ready(cross_entropy_loss_with_prob(probs, labels))
    ref = _reference(probs, labels)
    assert jnp.allclose(loss, ref, atol=1e-5, rtol=1e-5), (loss, ref)

    # Weighted NLL path.
    loss_w = jax.block_until_ready(
        cross_entropy_loss_with_prob(probs, labels, weight=class_weight))
    ref_w = _reference(probs, labels, weight=class_weight)
    assert jnp.allclose(loss_w, ref_w, atol=1e-5, rtol=1e-5), (loss_w, ref_w)

    # Ragged / multi-tile / multi-split path (forced small row tile).
    N2 = 40
    logits2 = jax.random.normal(k4, (N2, C), dtype=jnp.float32)
    probs2 = jax.nn.softmax(logits2, axis=-1)
    labels2 = jax.random.randint(k5, (N2,), 0, C, dtype=jnp.int32)
    loss2 = jax.block_until_ready(
        cross_entropy_loss_with_prob(probs2, labels2, weight=class_weight,
                                     block_rows=16))
    ref2 = _reference(probs2, labels2, weight=class_weight)
    assert jnp.allclose(loss2, ref2, atol=1e-5, rtol=1e-5), (loss2, ref2)

    print("KERNEL_OK")
</pallas_src>

<mosaic_0001>
module attributes {stable_mosaic.version = 11 : i64} {
  func.func @_ce_prob_kernel(%arg0: i32, %arg1: i32, %arg2: memref<8x1xi32, #tpu.memory_space<vmem>>, %arg3: memref<8x1xf32, #tpu.memory_space<vmem>>, %arg4: memref<8x32xf32, #tpu.memory_space<vmem>>, %arg5: memref<1x1xf32, #tpu.memory_space<vmem>>, %arg6: memref<1x1xf32, #tpu.memory_space<vmem>>, %arg7: memref<8x1xf32, #tpu.memory_space<vmem>>, %arg8: memref<8x1xf32, #tpu.memory_space<vmem>>) attributes {dimension_semantics = [#tpu.dimension_semantics<parallel>, #tpu.dimension_semantics<arbitrary>], iteration_bounds = array<i64: 1, 1>, scalar_prefetch = 0 : i64, scratch_operands = 2 : i64, tpu.core_type = #tpu.core_type<tc>, window_params = [{transform_indices = @transform_0, window_bounds = array<i64: 8, 1>}, {transform_indices = @transform_1, window_bounds = array<i64: 8, 1>}, {transform_indices = @transform_2, window_bounds = array<i64: 8, 32>}, {transform_indices = @transform_3, window_bounds = array<i64: 1, 1>}, {transform_indices = @transform_4, window_bounds = array<i64: 1, 1>}]} {
    %c0_i32 = arith.constant 0 : i32
    %0 = arith.cmpi eq, %arg1, %c0_i32 : i32
    %1 = arith.extui %0 : i1 to i32
    %c0_i32_0 = arith.constant 0 : i32
    %2 = arith.cmpi ne, %1, %c0_i32_0 : i32
    scf.if %2 {
      %cst_22 = arith.constant 0.000000e+00 : f32
      %40 = vector.broadcast %cst_22 : f32 to vector<8x1xf32>
      %c0_23 = arith.constant 0 : index
      %c0_24 = arith.constant 0 : index
      %41 = vector.load %arg7[%c0_23, %c0_24] : memref<8x1xf32, #tpu.memory_space<vmem>>, vector<8x1xf32>
      tpu.vector_store %arg7[%c0_23, %c0_24], %40 {strides = array<i32>} : memref<8x1xf32, #tpu.memory_space<vmem>>, vector<8x1xf32>,
      %cst_25 = arith.constant 0.000000e+00 : f32
      %42 = vector.broadcast %cst_25 : f32 to vector<8x1xf32>
      %c0_26 = arith.constant 0 : index
      %c0_27 = arith.constant 0 : index
      %43 = vector.load %arg8[%c0_26, %c0_27] : memref<8x1xf32, #tpu.memory_space<vmem>>, vector<8x1xf32>
      tpu.vector_store %arg8[%c0_26, %c0_27], %42 {strides = array<i32>} : memref<8x1xf32, #tpu.memory_space<vmem>>, vector<8x1xf32>,
    } else {
    }
    %c0 = arith.constant 0 : index
    %c0_1 = arith.constant 0 : index
    %3 = vector.load %arg4[%c0, %c0_1] : memref<8x32xf32, #tpu.memory_space<vmem>>, vector<8x32xf32>
    %c0_2 = arith.constant 0 : index
    %c0_3 = arith.constant 0 : index
    %4 = vector.load %arg2[%c0_2, %c0_3] : memref<8x1xi32, #tpu.memory_space<vmem>>, vector<8x1xi32>
    %c0_4 = arith.constant 0 : index
    %c0_5 = arith.constant 0 : index
    %5 = vector.load %arg3[%c0_4, %c0_5] : memref<8x1xf32, #tpu.memory_space<vmem>>, vector<8x1xf32>
    %6 = tpu.iota {dimensions = array<i32: 1>} : vector<8x32xi32>
    %7 = vector.broadcast %4 : vector<8x1xi32> to vector<8x32xi32>
    %8 = arith.cmpi eq, %6, %7 : vector<8x32xi32>
    %cst = arith.constant 0.000000e+00 : f32
    %9 = vector.broadcast %cst : f32 to vector<8x32xf32>
    %10 = arith.select %8, %3, %9 : vector<8x32xi1>, vector<8x32xf32>
    %cst_6 = arith.constant dense<0.000000e+00> : vector<8xf32>
    %11 = vector.multi_reduction <add>, %10, %cst_6 [1] : vector<8x32xf32> to vector<8xf32>
    %12 = vector.shape_cast %11 : vector<8xf32> to vector<8x1xf32>
    %cst_7 = arith.constant 9.99999993E-9 : f32
    %13 = vector.broadcast %cst_7 : f32 to vector<8x1xf32>
    %14 = arith.maximumf %12, %13 : vector<8x1xf32>
    %15 = math.log %14 : vector<8x1xf32>
    %c1_i32 = arith.constant 1 : i32
    %16 = arith.muli %arg0, %c1_i32 : i32
    %17 = arith.addi %16, %arg1 : i32
    %18 = tpu.iota {dimensions = array<i32: 0>} : vector<8x1xi32>
    %c8_i32 = arith.constant 8 : i32
    %19 = arith.muli %17, %c8_i32 : i32
    %20 = vector.broadcast %19 : i32 to vector<8x1xi32>
    %21 = arith.addi %18, %20 : vector<8x1xi32>
    %c8_i32_8 = arith.constant 8 : i32
    %22 = vector.broadcast %c8_i32_8 : i32 to vector<8x1xi32>
    %23 = arith.cmpi slt, %21, %22 : vector<8x1xi32>
    %cst_9 = arith.constant 0.000000e+00 : f32
    %24 = vector.broadcast %cst_9 : f32 to vector<8x1xf32>
    %25 = arith.select %23, %5, %24 : vector<8x1xi1>, vector<8x1xf32>
    %cst_10 = arith.constant 0.000000e+00 : f32
    %26 = vector.broadcast %cst_10 : f32 to vector<8x1xf32>
    %27 = arith.subf %26, %15 : vector<8x1xf32>
    %28 = arith.mulf %27, %25 : vector<8x1xf32>
    %cst_11 = arith.constant 0.000000e+00 : f32
    %29 = vector.broadcast %cst_11 : f32 to vector<8x1xf32>
    %30 = arith.select %23, %28, %29 : vector<8x1xi1>, vector<8x1xf32>
    %c0_12 = arith.constant 0 : index
    %c0_13 = arith.constant 0 : index
    %31 = vector.load %arg7[%c0_12, %c0_13] : memref<8x1xf32, #tpu.memory_space<vmem>>, vector<8x1xf32>
    %32 = arith.addf %31, %30 : vector<8x1xf32>
    %c0_14 = arith.constant 0 : index
    %c0_15 = arith.constant 0 : index
    %33 = vector.load %arg7[%c0_14, %c0_15] : memref<8x1xf32, #tpu.memory_space<vmem>>, vector<8x1xf32>
    tpu.vector_store %arg7[%c0_14, %c0_15], %32 {strides = array<i32>} : memref<8x1xf32, #tpu.memory_space<vmem>>, vector<8x1xf32>,
    %c0_16 = arith.constant 0 : index
    %c0_17 = arith.constant 0 : index
    %34 = vector.load %arg8[%c0_16, %c0_17] : memref<8x1xf32, #tpu.memory_space<vmem>>, vector<8x1xf32>
    %35 = arith.addf %34, %25 : vector<8x1xf32>
    %c0_18 = arith.constant 0 : index
    %c0_19 = arith.constant 0 : index
    %36 = vector.load %arg8[%c0_18, %c0_19] : memref<8x1xf32, #tpu.memory_space<vmem>>, vector<8x1xf32>
    tpu.vector_store %arg8[%c0_18, %c0_19], %35 {strides = array<i32>} : memref<8x1xf32, #tpu.memory_space<vmem>>, vector<8x1xf32>,
    %c0_i32_20 = arith.constant 0 : i32
    %37 = arith.cmpi eq, %arg1, %c0_i32_20 : i32
    %38 = arith.extui %37 : i1 to i32
    %c0_i32_21 = arith.constant 0 : i32
    %39 = arith.cmpi ne, %38, %c0_i32_21 : i32
    scf.if %39 {
      %c0_22 = arith.constant 0 : index
      %c0_23 = arith.constant 0 : index
      %40 = vector.load %arg7[%c0_22, %c0_23] : memref<8x1xf32, #tpu.memory_space<vmem>>, vector<8x1xf32>
      %cst_24 = arith.constant dense<0.000000e+00> : vector<1xf32>
      %41 = vector.multi_reduction <add>, %40, %cst_24 [0] : vector<8x1xf32> to vector<1xf32>
      %42 = vector.shape_cast %41 : vector<1xf32> to vector<1x1xf32>
      %c0_25 = arith.constant 0 : index
      %c0_26 = arith.constant 0 : index
      %43 = vector.load %arg5[%c0_25, %c0_26] : memref<1x1xf32, #tpu.memory_space<vmem>>, vector<1x1xf32>
      tpu.vector_store %arg5[%c0_25, %c0_26], %42 {strides = array<i32>} : memref<1x1xf32, #tpu.memory_space<vmem>>, vector<1x1xf32>,
      %c0_27 = arith.constant 0 : index
      %c0_28 = arith.constant 0 : index
      %44 = vector.load %arg8[%c0_27, %c0_28] : memref<8x1xf32, #tpu.memory_space<vmem>>, vector<8x1xf32>
      %cst_29 = arith.constant dense<0.000000e+00> : vector<1xf32>
      %45 = vector.multi_reduction <add>, %44, %cst_29 [0] : vector<8x1xf32> to vector<1xf32>
      %46 = vector.shape_cast %45 : vector<1xf32> to vector<1x1xf32>
      %c0_30 = arith.constant 0 : index
      %c0_31 = arith.constant 0 : index
      %47 = vector.load %arg6[%c0_30, %c0_31] : memref<1x1xf32, #tpu.memory_space<vmem>>, vector<1x1xf32>
      tpu.vector_store %arg6[%c0_30, %c0_31], %46 {strides = array<i32>} : memref<1x1xf32, #tpu.memory_space<vmem>>, vector<1x1xf32>,
    } else {
    }
    return
  }
  func.func @transform_0(%arg0: i32, %arg1: i32) -> (i32, i32) {
    %c1_i32 = arith.constant 1 : i32
    %0 = arith.muli %arg0, %c1_i32 : i32
    %1 = arith.addi %0, %arg1 : i32
    %c0_i32 = arith.constant 0 : i32
    %2 = arith.minsi %1, %c0_i32 : i32
    %c0_i32_0 = arith.constant 0 : i32
    %c0_i32_1 = arith.constant 0 : i32
    return %2, %c0_i32_0 : i32, i32
  }
  func.func @transform_1(%arg0: i32, %arg1: i32) -> (i32, i32) {
    %c1_i32 = arith.constant 1 : i32
    %0 = arith.muli %arg0, %c1_i32 : i32
    %1 = arith.addi %0, %arg1 : i32
    %c0_i32 = arith.constant 0 : i32
    %2 = arith.minsi %1, %c0_i32 : i32
    %c0_i32_0 = arith.constant 0 : i32
    %c0_i32_1 = arith.constant 0 : i32
    return %2, %c0_i32_0 : i32, i32
  }
  func.func @transform_2(%arg0: i32, %arg1: i32) -> (i32, i32) {
    %c1_i32 = arith.constant 1 : i32
    %0 = arith.muli %arg0, %c1_i32 : i32
    %1 = arith.addi %0, %arg1 : i32
    %c0_i32 = arith.constant 0 : i32
    %2 = arith.minsi %1, %c0_i32 : i32
    %c0_i32_0 = arith.constant 0 : i32
    %c0_i32_1 = arith.constant 0 : i32
    return %2, %c0_i32_0 : i32, i32
  }
  func.func @transform_3(%arg0: i32, %arg1: i32) -> (i32, i32) {
    %c0_i32 = arith.constant 0 : i32
    %c0_i32_0 = arith.constant 0 : i32
    return %arg0, %c0_i32 : i32, i32
  }
  func.func @transform_4(%arg0: i32, %arg1: i32) -> (i32, i32) {
    %c0_i32 = arith.constant 0 : i32
    %c0_i32_0 = arith.constant 0 : i32
    return %arg0, %c0_i32 : i32, i32
  }
}

</mosaic_0001>

<bundles_post_ra>
// kernel: tpu_custom_call.1
= control target key start
LH: loop header
LB: loop body
LE: loop exit
PB: predicated region body
PF: predicated region fallthrough
CT: control target
= control target key end

     0   :  { %10 = vsyncpa [#allocation5], 0  ;;  %s312_s0 = inlined_call_operand.vmem [shape: s32[8,1], index: 0, kind: input, shape index: {}]   ;;  %s313_s1 = inlined_call_operand.vmem [shape: f32[8,1], index: 1, kind: input, shape index: {}]   ;;  %s314_s2 = inlined_call_operand.vmem [shape: f32[8,32], index: 2, kind: input, shape index: {}]   ;;  %s315_s3 = inlined_call_operand.hbm [shape: f32[1,1], index: 3, kind: output, shape index: {0}]   ;;  %s316_s4 = inlined_call_operand.hbm [shape: f32[1,1], index: 4, kind: output, shape index: {1}]  }
   0x1   :  { %v107_v0 = vld [vmem:[%s312_s0] sm:$0xff] }
   0x2   :  { %11 = vsyncpa [#allocation7], 0  ;;  %v260_v1 = vmov 0   ;;  %v109_v2 = vlaneseq  ;;  %v106_v4 = vld [vmem:[%s314_s2] sm:$0xff]  ;;  %vm116_vm0 = vcmask 261120   ;;  %vm103_vm2 = vcmask 7168  }
   0x3   :  { %213 = vset.pattern.permute.xlu0 %v260_v1  ;;  %v261_v8 = vmov 0.0   ;;  %v108_v9 = vld [vmem:[%s313_s1] sm:$0xff]  ;;  %vm152_vm3 = vcmask 0   ;;  %s262_s2 = smov [#allocation6]  }
   0x4   :  { %112 = vperm.xlu0 %213, %v107_v0   ;;  %v110_v3 = vand.u32 127, %v109_v2  ;;  %104 = vst.msk [vmem:[#allocation2] sm:$0xff] %vm103_vm2, %v261_v8  ;;  %105 = vst.msk [vmem:[#allocation3] sm:$0xff] %vm103_vm2, %v261_v8  ;;  %s179_s20 = sshll.u32 %s262_s2, 4  ;;  %s180_s20 = int_to_ptr.vmem [resolvable:$true] %s179_s20 }
   0x5   :  { %s216_s1 = scalar_lea.vmem %s180_s20, 16  ;;  %s220_s21 = scalar_lea.vmem %s180_s20, 32 }
   0x6   :  { %p217_p0 = scmp.ne.s32.totalorder %s180_s20, %s216_s1  ;;  %p221_p1 = scmp.lt.s32.totalorder %s180_s20, %s180_s20 }
   0x7   :  { %p222_p2 = scmp.lt.s32.totalorder %s220_s21, %s216_s1 }
   0x9   :  { %p223_p3 = por %p222_p2, %p221_p1 }
   0xb   :  { %v138_v10 = vld [vmem:[#allocation3] sm:$0xff]  ;;  %p224_p4 = pnand %p223_p3, %p217_p0 }
   0xc   :  { %v139_v11 = vadd.f32 %v138_v10, %v108_v9 }
   0xe   :  { %140 = vst.msk [vmem:[#allocation3] sm:$0xff] %vm103_vm2, %v139_v11 }
  0x15   :  { %v154_v12 = vld [vmem:[#allocation3] sm:$0xff] }
  0x16   :  { %v155_v13 = vsel %vm103_vm2, %v154_v12, 0.0 }
  0x17   :  { %v156_v14 = vrot.slane %v155_v13, 4 }
  0x19   :  { %v157_v15 = vadd.f32 %v156_v14, %v155_v13 }
  0x1b   :  { %v158_v16 = vrot.slane %v157_v15, 2 }
  0x1d   :  { %v159_v17 = vadd.f32 %v158_v16, %v157_v15 }
  0x1f   :  { %v160_v18 = vrot.slane %v159_v17, 1 }
  0x21   :  { %v161_v19 = vadd.f32 %v160_v18, %v159_v17 }
  0x23   :  { %162 = vst.msk [vmem:[#allocation6] sm:$0x1] %vm152_vm3, %v161_v19 }
  0x7f   :  { %v113_v5 = vpop.permute.xlu0 %112 }
  0x80   :  { %vm114_vm1 = vcmp.eq.s32.totalorder %v110_v3, %v113_v5 }
  0x81   :  { %v115_v6 = vsel %vm114_vm1, %v106_v4, 0.0 }
  0x82   :  { %v117_v7 = vsel %vm116_vm0, %v115_v6, 0.0 }
  0x83   :  { %118 = vadd.xlane.f32.xlu0 %v117_v7 }
  0x84   :  { %227 = shalt.err (!%p224_p4)
}
  0x85   :  { %182 = dma.vmem_to_hbm [thread:$0]  %s180_s20, 16, %s316_s4, [#allocation7]   ;;  %v134_v25 = vld [vmem:[#allocation2] sm:$0xff] }
  0x86   :  { %s263_s24 = smov [#allocation4]  }
  0x87   :  { %s169_s4 = sshll.u32 %s263_s24, 4  ;;  %s170_s4 = int_to_ptr.vmem [resolvable:$true] %s169_s4 }
  0x88   :  { %s236_s25 = scalar_lea.vmem %s170_s4, 16  ;;  %s240_s26 = scalar_lea.vmem %s170_s4, 32 }
  0x89   :  { %p237_p5 = scmp.ne.s32.totalorder %s170_s4, %s236_s25  ;;  %p241_p6 = scmp.lt.s32.totalorder %s170_s4, %s170_s4 }
  0x8a   :  { %p242_p7 = scmp.lt.s32.totalorder %s240_s26, %s236_s25 }
  0x8c   :  { %p243_p8 = por %p242_p7, %p241_p6 }
  0x8e   :  { %p244_p9 = pnand %p243_p8, %p237_p5 }
 0x10c   :  { %v119_v20 = vpop.xlane.xlu0 %118 }
 0x10d   :  { %v120_v21 = vmax.f32 %v119_v20, 1e-08 }
 0x10f   :  { %214 = vlog2.f32 %v120_v21 }
 0x11c   :  { %v215_v22 = vpop.eup %214 }
 0x11d   :  { %v122_v23 = vmul.f32 0.6931472, %v215_v22 }
 0x11f   :  { %v131_v24 = vsub.f32 0.0, %v122_v23 }
 0x121   :  { %v132_v26 = vmul.f32 %v131_v24, %v108_v9 }
 0x123   :  { %v135_v27 = vadd.f32 %v134_v25, %v132_v26 }
 0x125   :  { %137 = vst.msk [vmem:[#allocation2] sm:$0xff] %vm103_vm2, %v135_v27 }
 0x12c   :  { %v144_v28 = vld [vmem:[#allocation2] sm:$0xff] }
 0x12d   :  { %v145_v29 = vsel %vm103_vm2, %v144_v28, 0.0 }
 0x12e   :  { %v146_v30 = vrot.slane %v145_v29, 4 }
 0x130   :  { %v147_v31 = vadd.f32 %v146_v30, %v145_v29 }
 0x132   :  { %v148_v32 = vrot.slane %v147_v31, 2 }
 0x134   :  { %v149_v33 = vadd.f32 %v148_v32, %v147_v31 }
 0x136   :  { %v150_v34 = vrot.slane %v149_v33, 1 }
 0x138   :  { %v151_v35 = vadd.f32 %v150_v34, %v149_v33 }
 0x13a   :  { %153 = vst.msk [vmem:[#allocation4] sm:$0x1] %vm152_vm3, %v151_v35 }
 0x13b   :  { %247 = shalt.err (!%p244_p9)
}
 0x13c   :  { %172 = dma.vmem_to_hbm [thread:$0]  %s170_s4, 16, %s315_s3, [#allocation5]  }
 0x13d   :  { %256 = dma.done.wait [#allocation5], 16  }
 0x13e   :  { %257 = vsyncadd [#allocation5], 4294967280 }
 0x13f   :  { %258 = dma.done.wait [#allocation7], 16  }
 0x140   :  { %259 = vsyncadd [#allocation7], 4294967280 }
 0x141   :  { %189 = vsyncpa [#allocation5], 1 }
 0x142   :  { %190 = vsyncpa [#allocation7], 1 }

</bundles_post_ra>
